<compile_context>
chip_gen: v5e
topology: v5e:2x2
jax: 0.10.0
libtpu: 0.0.40
codegen_flags: <defaults>
</compile_context>

<pallas_src>
import functools

import jax
import jax.numpy as jnp
from jax.experimental import pallas as pl
from jax.experimental.pallas import tpu as pltpu

LANE = 128  # internal (padded) lane width for all hidden dims / outputs


def _round_up(v, m):
    return ((v + m - 1) // m) * m


# ----------------------------------------------------------------------------
# Pallas kernel: encoder + shared MLP + fused actor/critic head
# ----------------------------------------------------------------------------
def _mimi_ppo_kernel(x_ref, we_ref, ws_ref, bs_ref, out_ref, *, action_dim):
    x = x_ref[...].astype(jnp.float32)                # (TB, obs_dim)
    b = bs_ref[...]                                   # (8, LANE) bias stack

    # encoder stand-in: Linear(obs_dim, 64 -> padded 128) + ReLU
    # TODO(synk): the real `enc` module is user-supplied; a Linear+ReLU
    # deterministic stand-in is used here.
    h = jnp.maximum(
        jnp.dot(x, we_ref[...], preferred_element_type=jnp.float32) + b[0:1, :], 0.0)
    # shared MLP: 3 x (Linear + ReLU), all padded to 128x128
    h = jnp.maximum(
        jnp.dot(h, ws_ref[0], preferred_element_type=jnp.float32) + b[1:2, :], 0.0)
    h = jnp.maximum(
        jnp.dot(h, ws_ref[1], preferred_element_type=jnp.float32) + b[2:3, :], 0.0)
    h = jnp.maximum(
        jnp.dot(h, ws_ref[2], preferred_element_type=jnp.float32) + b[3:4, :], 0.0)

    # fused head: cols [0:A] = actor (tanh), col A = critic value (identity)
    head = jnp.dot(h, ws_ref[3], preferred_element_type=jnp.float32) + b[4:5, :]
    lane = jax.lax.broadcasted_iota(jnp.int32, head.shape, dimension=1)
    out = jnp.where(lane < action_dim, jnp.tanh(head), head)

    out_ref[...] = out.astype(out_ref.dtype)


# ----------------------------------------------------------------------------
# Wrapper
# ----------------------------------------------------------------------------
def mimi_ppo_forward(x, packed, *, interpret=False):
    """Returns (dist, value); dist given as (mean, cov_diag, cov)."""
    B, obs_dim = x.shape
    A = int(packed["action_dim"])

    # Biggest batch tile that is a multiple of 8 and VMEM-safe on all chips.
    tile_b = min(_round_up(max(B, 1), 8), 2048)
    grid = (pl.cdiv(B, tile_b),)

    flops = 2 * B * (obs_dim * 64 + 64 * 32 + 32 * 32 + 32 * 32 + 32 * (A + 1))
    bytes_accessed = 4 * (x.size + packed["we"].size + packed["ws"].size +
                          packed["bs"].size + B * LANE)

    out = pl.pallas_call(
        functools.partial(_mimi_ppo_kernel, action_dim=A),
        out_shape=jax.ShapeDtypeStruct((B, LANE), jnp.float32),
        grid=grid,
        in_specs=[
            pl.BlockSpec((tile_b, obs_dim), lambda i: (i, 0)),        # x: streamed
            pl.BlockSpec(packed["we"].shape, lambda i: (0, 0)),       # encoder W (resident)
            pl.BlockSpec(packed["ws"].shape, lambda i: (0, 0, 0)),    # stacked Ws (resident)
            pl.BlockSpec(packed["bs"].shape, lambda i: (0, 0)),       # stacked biases
        ],
        out_specs=pl.BlockSpec((tile_b, LANE), lambda i: (i, 0)),     # lane-dense slab
        compiler_params=pltpu.CompilerParams(
            dimension_semantics=("parallel",)),
        cost_estimate=pl.CostEstimate(
            flops=flops, transcendentals=B * A, bytes_accessed=bytes_accessed),
        interpret=interpret,
    )(x.astype(jnp.float32), packed["we"], packed["ws"], packed["bs"])

    actor_mean = out[:, :A]
    value = out[:, A:A + 1]

    # std transform is param-only -> hoisted out of the kernel (plain JAX).
    s = packed["action_std"]                          # (A,)
    std = jnp.where(
        s <= 0.0,
        jnp.exp(jnp.minimum(s, 0.0)),
        jnp.log1p(jnp.maximum(s, 0.0) + 1e-6) + 1.0,
    )
    action_cov = jnp.diag(std)
    # dist ~ MultivariateNormal(actor_mean, diag(std)) represented by its stats.
    # TODO(synk): rsample/log_prob/entropy of the distribution are plain JAX
    # math on (mean, std) and intentionally live outside the kernel.
    dist = {"mean": actor_mean, "cov_diag": std, "cov": action_cov}
    return dist, value


# ----------------------------------------------------------------------------
# Parameter init (mirrors init_weights) + packing into kernel layout
# ----------------------------------------------------------------------------
def _orthogonal(key, shape):
    rows, cols = shape
    a = jax.random.normal(key, (rows, cols), dtype=jnp.float32)
    if rows < cols:
        q, r = jnp.linalg.qr(a.T)
        q = q * jnp.sign(jnp.diag(r))[None, :]
        w = q.T
    else:
        q, r = jnp.linalg.qr(a)
        q = q * jnp.sign(jnp.diag(r))[None, :]
        w = q
    return w[:rows, :cols].astype(jnp.float32)


def init_params(key, obs_dim, action_dim, encoder_output_size=64,
                hidden_layer_dim=32, action_std_init=0.5):
    """PyTorch-layout (out, in) weights; matches init_weights semantics."""
    ks = jax.random.split(key, 6)
    p = {}
    p["we"] = _orthogonal(ks[0], (encoder_output_size, obs_dim))
    p["be"] = jnp.zeros((encoder_output_size,), jnp.float32)
    p["w1"] = _orthogonal(ks[1], (hidden_layer_dim, encoder_output_size))
    p["b1"] = jnp.full((hidden_layer_dim,), 0.01, jnp.float32)
    p["w2"] = _orthogonal(ks[2], (hidden_layer_dim, hidden_layer_dim))
    p["b2"] = jnp.full((hidden_layer_dim,), 0.01, jnp.float32)
    p["w3"] = _orthogonal(ks[3], (32, hidden_layer_dim))
    p["b3"] = jnp.full((32,), 0.01, jnp.float32)
    p["wc"] = _orthogonal(ks[4], (1, hidden_layer_dim))
    p["bc"] = jnp.full((1,), 0.01, jnp.float32)
    p["wa"] = _orthogonal(ks[5], (action_dim, hidden_layer_dim))
    p["ba"] = jnp.full((action_dim,), 0.01, jnp.float32)
    p["action_std"] = jnp.full((action_dim,), action_std_init, jnp.float32)
    return p


def pack_params(p, obs_dim, action_dim, encoder_output_size=64,
                hidden_layer_dim=32):
    """Pre-transpose, zero-pad to 128 lanes, stack -> 4 kernel input arrays."""
    assert encoder_output_size <= LANE
    assert hidden_layer_dim <= LANE
    assert action_dim + 1 <= LANE

    we = jnp.zeros((obs_dim, LANE), jnp.float32)
    we = we.at[:, :encoder_output_size].set(p["we"].T)

    ws = jnp.zeros((4, LANE, LANE), jnp.float32)
    ws = ws.at[0, :encoder_output_size, :hidden_layer_dim].set(p["w1"].T)
    ws = ws.at[1, :hidden_layer_dim, :hidden_layer_dim].set(p["w2"].T)
    ws = ws.at[2, :hidden_layer_dim, :32].set(p["w3"].T)
    # fused head: cols [0:A] actor, col A critic
    ws = ws.at[3, :hidden_layer_dim, :action_dim].set(p["wa"].T)
    ws = ws.at[3, :hidden_layer_dim, action_dim:action_dim + 1].set(p["wc"].T)

    bs = jnp.zeros((8, LANE), jnp.float32)
    bs = bs.at[0, :encoder_output_size].set(p["be"])
    bs = bs.at[1, :hidden_layer_dim].set(p["b1"])
    bs = bs.at[2, :32].set(p["b2"])
    bs = bs.at[3, :32].set(p["b3"])
    bs = bs.at[4, :action_dim].set(p["ba"])
    bs = bs.at[4, action_dim].set(p["bc"][0])

    return {"we": we, "ws": ws, "bs": bs,
            "action_std": p["action_std"], "action_dim": action_dim}


# ----------------------------------------------------------------------------
# Pure-JAX reference (PyTorch semantics) for a sanity check
# ----------------------------------------------------------------------------
def reference_forward(x, p):
    h = jax.nn.relu(x @ p["we"].T + p["be"])
    h = jax.nn.relu(h @ p["w1"].T + p["b1"])
    h = jax.nn.relu(h @ p["w2"].T + p["b2"])
    h = jax.nn.relu(h @ p["w3"].T + p["b3"])
    value = h @ p["wc"].T + p["bc"]
    actor = jnp.tanh(h @ p["wa"].T + p["ba"])
    s = p["action_std"]
    below = jnp.exp(s) * (s <= 0)
    safe = s * (s > 0) + 1e-6
    above = (jnp.log1p(safe) + 1.0) * (s > 0)
    std = below + above
    return actor, value, std


# ----------------------------------------------------------------------------
if __name__ == "__main__":
    key = jax.random.PRNGKey(0)
    B, OBS_DIM, ACTION_DIM = 8, 16, 4

    pkey, xkey = jax.random.split(key)
    logical = init_params(pkey, OBS_DIM, ACTION_DIM, action_std_init=0.5)
    packed = pack_params(logical, OBS_DIM, ACTION_DIM)
    x = jax.random.normal(xkey, (B, OBS_DIM), dtype=jnp.float32)

    dist, value = mimi_ppo_forward(x, packed)
    jax.block_until_ready((dist["mean"], dist["cov"], value))

    assert dist["mean"].shape == (B, ACTION_DIM)
    assert dist["cov"].shape == (ACTION_DIM, ACTION_DIM)
    assert value.shape == (B, 1)

    ref_actor, ref_value, ref_std = reference_forward(x, logical)
    assert jnp.allclose(dist["mean"], ref_actor, atol=2e-2, rtol=2e-2)
    assert jnp.allclose(value, ref_value, atol=2e-2, rtol=2e-2)
    assert jnp.allclose(dist["cov_diag"], ref_std, atol=1e-5, rtol=1e-5)

    print("KERNEL_OK")
</pallas_src>

<mosaic_0001>
module attributes {stable_mosaic.version = 11 : i64} {
  func.func @_mimi_ppo_kernel(%arg0: i32, %arg1: memref<8x16xf32, #tpu.memory_space<vmem>>, %arg2: memref<16x128xf32, #tpu.memory_space<vmem>>, %arg3: memref<4x128x128xf32, #tpu.memory_space<vmem>>, %arg4: memref<8x128xf32, #tpu.memory_space<vmem>>, %arg5: memref<8x128xf32, #tpu.memory_space<vmem>>) attributes {dimension_semantics = [#tpu.dimension_semantics<parallel>], iteration_bounds = array<i64: 1>, scalar_prefetch = 0 : i64, scratch_operands = 0 : i64, tpu.core_type = #tpu.core_type<tc>, window_params = [{transform_indices = @transform_0, window_bounds = array<i64: 8, 16>}, {pipeline_mode = #tpu.pipeline_mode<synchronous>, transform_indices = @transform_1, window_bounds = array<i64: 16, 128>}, {pipeline_mode = #tpu.pipeline_mode<synchronous>, transform_indices = @transform_2, window_bounds = array<i64: 4, 128, 128>}, {pipeline_mode = #tpu.pipeline_mode<synchronous>, transform_indices = @transform_3, window_bounds = array<i64: 8, 128>}, {transform_indices = @transform_4, window_bounds = array<i64: 8, 128>}]} {
    %c0 = arith.constant 0 : index
    %c0_0 = arith.constant 0 : index
    %0 = vector.load %arg1[%c0, %c0_0] : memref<8x16xf32, #tpu.memory_space<vmem>>, vector<8x16xf32>
    %c0_1 = arith.constant 0 : index
    %c0_2 = arith.constant 0 : index
    %1 = vector.load %arg4[%c0_1, %c0_2] : memref<8x128xf32, #tpu.memory_space<vmem>>, vector<8x128xf32>
    %c0_3 = arith.constant 0 : index
    %c0_4 = arith.constant 0 : index
    %2 = vector.load %arg2[%c0_3, %c0_4] : memref<16x128xf32, #tpu.memory_space<vmem>>, vector<16x128xf32>
    %cst = arith.constant dense<0.000000e+00> : vector<8x128xf32>
    %3 = tpu.matmul %0, %2, %cst {dimension_numbers = #tpu.dot_dimension_numbers<[1], [0], [0], [1], [0, 0, 1, 1], [], []>} : vector<8x16xf32>, vector<16x128xf32>, vector<8x128xf32> -> vector<8x128xf32>
    %4 = vector.extract_strided_slice %1 {offsets = [0, 0], sizes = [1, 128], strides = [1, 1]} : vector<8x128xf32> to vector<1x128xf32>
    %5 = vector.broadcast %4 : vector<1x128xf32> to vector<8x128xf32>
    %6 = arith.addf %3, %5 : vector<8x128xf32>
    %cst_5 = arith.constant 0.000000e+00 : f32
    %7 = vector.broadcast %cst_5 : f32 to vector<8x128xf32>
    %8 = arith.maximumf %6, %7 : vector<8x128xf32>
    %c0_6 = arith.constant 0 : index
    %c0_7 = arith.constant 0 : index
    %c0_8 = arith.constant 0 : index
    %9 = vector.load %arg3[%c0_6, %c0_7, %c0_8] : memref<4x128x128xf32, #tpu.memory_space<vmem>>, vector<1x128x128xf32>
    %10 = vector.shape_cast %9 : vector<1x128x128xf32> to vector<128x128xf32>
    %cst_9 = arith.constant dense<0.000000e+00> : vector<8x128xf32>
    %11 = tpu.matmul %8, %10, %cst_9 {dimension_numbers = #tpu.dot_dimension_numbers<[1], [0], [0], [1], [0, 0, 1, 1], [], []>} : vector<8x128xf32>, vector<128x128xf32>, vector<8x128xf32> -> vector<8x128xf32>
    %12 = vector.extract_strided_slice %1 {offsets = [1, 0], sizes = [1, 128], strides = [1, 1]} : vector<8x128xf32> to vector<1x128xf32>
    %13 = vector.broadcast %12 : vector<1x128xf32> to vector<8x128xf32>
    %14 = arith.addf %11, %13 : vector<8x128xf32>
    %cst_10 = arith.constant 0.000000e+00 : f32
    %15 = vector.broadcast %cst_10 : f32 to vector<8x128xf32>
    %16 = arith.maximumf %14, %15 : vector<8x128xf32>
    %c1 = arith.constant 1 : index
    %c0_11 = arith.constant 0 : index
    %c0_12 = arith.constant 0 : index
    %17 = vector.load %arg3[%c1, %c0_11, %c0_12] : memref<4x128x128xf32, #tpu.memory_space<vmem>>, vector<1x128x128xf32>
    %18 = vector.shape_cast %17 : vector<1x128x128xf32> to vector<128x128xf32>
    %cst_13 = arith.constant dense<0.000000e+00> : vector<8x128xf32>
    %19 = tpu.matmul %16, %18, %cst_13 {dimension_numbers = #tpu.dot_dimension_numbers<[1], [0], [0], [1], [0, 0, 1, 1], [], []>} : vector<8x128xf32>, vector<128x128xf32>, vector<8x128xf32> -> vector<8x128xf32>
    %20 = vector.extract_strided_slice %1 {offsets = [2, 0], sizes = [1, 128], strides = [1, 1]} : vector<8x128xf32> to vector<1x128xf32>
    %21 = vector.broadcast %20 : vector<1x128xf32> to vector<8x128xf32>
    %22 = arith.addf %19, %21 : vector<8x128xf32>
    %cst_14 = arith.constant 0.000000e+00 : f32
    %23 = vector.broadcast %cst_14 : f32 to vector<8x128xf32>
    %24 = arith.maximumf %22, %23 : vector<8x128xf32>
    %c2 = arith.constant 2 : index
    %c0_15 = arith.constant 0 : index
    %c0_16 = arith.constant 0 : index
    %25 = vector.load %arg3[%c2, %c0_15, %c0_16] : memref<4x128x128xf32, #tpu.memory_space<vmem>>, vector<1x128x128xf32>
    %26 = vector.shape_cast %25 : vector<1x128x128xf32> to vector<128x128xf32>
    %cst_17 = arith.constant dense<0.000000e+00> : vector<8x128xf32>
    %27 = tpu.matmul %24, %26, %cst_17 {dimension_numbers = #tpu.dot_dimension_numbers<[1], [0], [0], [1], [0, 0, 1, 1], [], []>} : vector<8x128xf32>, vector<128x128xf32>, vector<8x128xf32> -> vector<8x128xf32>
    %28 = vector.extract_strided_slice %1 {offsets = [3, 0], sizes = [1, 128], strides = [1, 1]} : vector<8x128xf32> to vector<1x128xf32>
    %29 = vector.broadcast %28 : vector<1x128xf32> to vector<8x128xf32>
    %30 = arith.addf %27, %29 : vector<8x128xf32>
    %cst_18 = arith.constant 0.000000e+00 : f32
    %31 = vector.broadcast %cst_18 : f32 to vector<8x128xf32>
    %32 = arith.maximumf %30, %31 : vector<8x128xf32>
    %c3 = arith.constant 3 : index
    %c0_19 = arith.constant 0 : index
    %c0_20 = arith.constant 0 : index
    %33 = vector.load %arg3[%c3, %c0_19, %c0_20] : memref<4x128x128xf32, #tpu.memory_space<vmem>>, vector<1x128x128xf32>
    %34 = vector.shape_cast %33 : vector<1x128x128xf32> to vector<128x128xf32>
    %cst_21 = arith.constant dense<0.000000e+00> : vector<8x128xf32>
    %35 = tpu.matmul %32, %34, %cst_21 {dimension_numbers = #tpu.dot_dimension_numbers<[1], [0], [0], [1], [0, 0, 1, 1], [], []>} : vector<8x128xf32>, vector<128x128xf32>, vector<8x128xf32> -> vector<8x128xf32>
    %36 = vector.extract_strided_slice %1 {offsets = [4, 0], sizes = [1, 128], strides = [1, 1]} : vector<8x128xf32> to vector<1x128xf32>
    %37 = vector.broadcast %36 : vector<1x128xf32> to vector<8x128xf32>
    %38 = arith.addf %35, %37 : vector<8x128xf32>
    %39 = tpu.iota {dimensions = array<i32: 1>} : vector<8x128xi32>
    %c4_i32 = arith.constant 4 : i32
    %40 = vector.broadcast %c4_i32 : i32 to vector<8x128xi32>
    %41 = arith.cmpi slt, %39, %40 : vector<8x128xi32>
    %42 = math.tanh %38 : vector<8x128xf32>
    %43 = arith.select %41, %42, %38 : vector<8x128xi1>, vector<8x128xf32>
    %c0_22 = arith.constant 0 : index
    %c0_23 = arith.constant 0 : index
    %44 = vector.load %arg5[%c0_22, %c0_23] : memref<8x128xf32, #tpu.memory_space<vmem>>, vector<8x128xf32>
    tpu.vector_store %arg5[%c0_22, %c0_23], %43 {strides = array<i32>} : memref<8x128xf32, #tpu.memory_space<vmem>>, vector<8x128xf32>,
    return
  }
  func.func @transform_0(%arg0: i32) -> (i32, i32) {
    %c0_i32 = arith.constant 0 : i32
    %c0_i32_0 = arith.constant 0 : i32
    return %arg0, %c0_i32 : i32, i32
  }
  func.func @transform_1(%arg0: i32) -> (i32, i32) {
    %c0_i32 = arith.constant 0 : i32
    %c0_i32_0 = arith.constant 0 : i32
    %c0_i32_1 = arith.constant 0 : i32
    return %c0_i32, %c0_i32_0 : i32, i32
  }
  func.func @transform_2(%arg0: i32) -> (i32, i32, i32) {
    %c0_i32 = arith.constant 0 : i32
    %c0_i32_0 = arith.constant 0 : i32
    %c0_i32_1 = arith.constant 0 : i32
    %c0_i32_2 = arith.constant 0 : i32
    return %c0_i32, %c0_i32_0, %c0_i32_1 : i32, i32, i32
  }
  func.func @transform_3(%arg0: i32) -> (i32, i32) {
    %c0_i32 = arith.constant 0 : i32
    %c0_i32_0 = arith.constant 0 : i32
    %c0_i32_1 = arith.constant 0 : i32
    return %c0_i32, %c0_i32_0 : i32, i32
  }
  func.func @transform_4(%arg0: i32) -> (i32, i32) {
    %c0_i32 = arith.constant 0 : i32
    %c0_i32_0 = arith.constant 0 : i32
    return %arg0, %c0_i32 : i32, i32
  }
}

</mosaic_0001>

<bundles_post_ra>
// kernel: tpu_custom_call.1
= control target key start
LH: loop header
LB: loop body
LE: loop exit
PB: predicated region body
PF: predicated region fallthrough
CT: control target
= control target key end

     0   :  { %9 = vsyncpa [#allocation3], 0  ;;  %s478_s0 = inlined_call_operand.hbm [shape: f32[8,16], index: 0, kind: input, shape index: {}]   ;;  %s479_s1 = inlined_call_operand.hbm [shape: f32[16,128], index: 1, kind: input, shape index: {}]   ;;  %s480_s2 = inlined_call_operand.hbm [shape: f32[4,128,128], index: 2, kind: input, shape index: {}]   ;;  %s481_s3 = inlined_call_operand.hbm [shape: f32[8,128], index: 3, kind: input, shape index: {}]   ;;  %s482_s4 = inlined_call_operand.hbm [shape: f32[8,128], index: 4, kind: output, shape index: {}]  }
   0x1   :  { %10 = vsyncpa [#allocation6], 0 }
   0x2   :  { %11 = vsyncpa [#allocation9], 0  ;;  %s28_s17 = sshll.u32 %s479_s1, 4  ;;  %s29_s17 = int_to_ptr.hbm [resolvable:$true] %s28_s17 }
   0x3   :  { %12 = vsyncpa [#allocation4], 0  ;;  %s424_s18 = smov [#allocation5]   ;;  %s18_s22 = sshll.u32 %s478_s0, 4  ;;  %s19_s22 = int_to_ptr.hbm [resolvable:$true] %s18_s22 }
   0x4   :  { %s30_s19 = sshll.u32 %s424_s18, 4  ;;  %s425_s23 = smov 128   ;;  %s31_s19 = int_to_ptr.vmem [resolvable:$true] %s30_s19 }
   0x5   :  { %s426_s24 = smov 8   ;;  %s427_s25 = smov [#allocation2]  }
   0x6   :  { %36 = dma.hbm_to_vmem [thread:$0]  %s29_s17, 256, %s31_s19, [#allocation6], %s425_s23, %s425_s23, %s426_s24  }
   0x7   :  { %s20_s26 = sshll.u32 %s427_s25, 4  ;;  %s41_s29 = sshll.u32 %s480_s2, 4  ;;  %s21_s26 = int_to_ptr.vmem [resolvable:$true] %s20_s26  ;;  %s42_s29 = int_to_ptr.hbm [resolvable:$true] %s41_s29 }
   0x8   :  { %23 = dma.hbm_to_vmem [thread:$0]  %s19_s22, 128, %s21_s26, [#allocation3]  }
   0x9   :  { %s55_s5 = sshll.u32 %s481_s3, 4  ;;  %s428_s6 = smov [#allocation7]   ;;  %s56_s5 = int_to_ptr.hbm [resolvable:$true] %s55_s5 }
   0xa   :  { %s43_s7 = sshll.u32 %s428_s6, 4  ;;  %s429_s0 = smov [#allocation8]   ;;  %s44_s7 = int_to_ptr.vmem [resolvable:$true] %s43_s7 }
   0xb   :  { %49 = dma.hbm_to_vmem [thread:$0]  %s42_s29, 8192, %s44_s7, [#allocation6], %s425_s23, %s425_s23, %s426_s24  }
   0xc   :  { %s57_s8 = sshll.u32 %s429_s0, 4  ;;  %s58_s8 = int_to_ptr.vmem [resolvable:$true] %s57_s8 }
   0xd   :  { %60 = dma.hbm_to_vmem [thread:$0]  %s56_s5, 128, %s58_s8, [#allocation9]  }
   0xe   :  { %416 = dma.done.wait [#allocation3], 128  }
   0xf   :  { %417 = vsyncadd [#allocation3], 4294967168 }
  0x10   :  { %418 = dma.done.wait [#allocation6], 8448  }
  0x11   :  { %419 = vsyncadd [#allocation6], 4294958848 }
  0x12   :  { %420 = dma.done.wait [#allocation9], 128  }
  0x13   :  { %421 = vsyncadd [#allocation9], 4294967168  ;;  %v80_v0 = vld [vmem:[#allocation5 + $0x8] sm:$0xff]  ;;  %v79_v1 = vld [vmem:[#allocation5] sm:$0xff]  ;;  %vm82_vm0 = vcmask 130048   ;;  %s430_s2 = smov [#allocation10]  }
  0x14   :  { %100 = vmatpush.msra.mxu0 %v80_v0  ;;  %v77_v2 = vld [vmem:[#allocation2] sm:$0xff]  ;;  %v122_v3 = vld [vmem:[#allocation7 + $0x78] sm:$0xff]  ;;  %v121_v4 = vld [vmem:[#allocation7 + $0x70] sm:$0xff]  ;;  %s272_s3 = sshll.u32 %s430_s2, 4  ;;  %s274_s11 = sshll.u32 %s482_s4, 4  ;;  %s273_s3 = int_to_ptr.vmem [resolvable:$true] %s272_s3  ;;  %s275_s11 = int_to_ptr.hbm [resolvable:$true] %s274_s11 }
  0x15   :  { %124 = vmatpush.msra.mxu1 %v122_v3  ;;  %v120_v5 = vld [vmem:[#allocation7 + $0x68] sm:$0xff]  ;;  %v119_v6 = vld [vmem:[#allocation7 + $0x60] sm:$0xff]  ;;  %v118_v7 = vld [vmem:[#allocation7 + $0x58] sm:$0xff] }
  0x16   :  { %101 = vmatpush.msra.mxu0 %v79_v1  ;;  %v117_v8 = vld [vmem:[#allocation7 + $0x50] sm:$0xff]  ;;  %v116_v9 = vld [vmem:[#allocation7 + $0x48] sm:$0xff]  ;;  %v115_v10 = vld [vmem:[#allocation7 + $0x40] sm:$0xff] }
  0x17   :  { %286 = vmatmul.msk.f32.vlgmr.msra.gmra.mxu0 %vm82_vm0, %v77_v2  ;;  %125 = vmatpush.msra.mxu1 %v121_v4  ;;  %v114_v11 = vld [vmem:[#allocation7 + $0x38] sm:$0xff]  ;;  %v113_v12 = vld [vmem:[#allocation7 + $0x30] sm:$0xff]  ;;  %v112_v13 = vld [vmem:[#allocation7 + $0x28] sm:$0xff] }
  0x18   :  { %v111_v14 = vld [vmem:[#allocation7 + $0x20] sm:$0xff]  ;;  %v110_v15 = vld [vmem:[#allocation7 + $0x18] sm:$0xff]  ;;  %v109_v16 = vld [vmem:[#allocation7 + $0x10] sm:$0xff] }
  0x19   :  { %126 = vmatpush.msra.mxu1 %v120_v5  ;;  %v108_v17 = vld [vmem:[#allocation7 + $0x8] sm:$0xff]  ;;  %v107_v18 = vld [vmem:[#allocation7] sm:$0xff]  ;;  %v161_v19 = vld [vmem:[#allocation7 + $0xf8] sm:$0xff] }
  0x1a   :  { %v160_v20 = vld [vmem:[#allocation7 + $0xf0] sm:$0xff]  ;;  %163 = vmatpush.msra.mxu2 %v161_v19  ;;  %v159_v21 = vld [vmem:[#allocation7 + $0xe8] sm:$0xff]  ;;  %v158_v22 = vld [vmem:[#allocation7 + $0xe0] sm:$0xff] }
  0x1b   :  { %127 = vmatpush.msra.mxu1 %v119_v6  ;;  %v157_v23 = vld [vmem:[#allocation7 + $0xd8] sm:$0xff]  ;;  %v156_v24 = vld [vmem:[#allocation7 + $0xd0] sm:$0xff]  ;;  %v155_v25 = vld [vmem:[#allocation7 + $0xc8] sm:$0xff] }
  0x1c   :  { %164 = vmatpush.msra.mxu2 %v160_v20  ;;  %v154_v26 = vld [vmem:[#allocation7 + $0xc0] sm:$0xff]  ;;  %v153_v27 = vld [vmem:[#allocation7 + $0xb8] sm:$0xff]  ;;  %v152_v28 = vld [vmem:[#allocation7 + $0xb0] sm:$0xff] }
  0x1d   :  { %128 = vmatpush.msra.mxu1 %v118_v7  ;;  %v151_v29 = vld [vmem:[#allocation7 + $0xa8] sm:$0xff]  ;;  %v150_v30 = vld [vmem:[#allocation7 + $0xa0] sm:$0xff]  ;;  %v149_v32 = vld [vmem:[#allocation7 + $0x98] sm:$0xff] }
  0x1e   :  { %165 = vmatpush.msra.mxu2 %v159_v21  ;;  %v468_v31 = vld [vmem:[#allocation8] sm:$0xff]  ;;  %v148_v37 = vld [vmem:[#allocation7 + $0x90] sm:$0xff]  ;;  %v147_v38 = vld [vmem:[#allocation7 + $0x88] sm:$0xff]  ;;  %v261_v21 = vlaneseq }
  0x1f   :  { %129 = vmatpush.msra.mxu1 %v117_v8  ;;  %v81_v33 = vperm.slane %v468_v31, 0  ;;  %v146_v39 = vld [vmem:[#allocation7 + $0x80] sm:$0xff]  ;;  %v200_v40 = vld [vmem:[#allocation7 + $0x178] sm:$0xff]  ;;  %v199_v41 = vld [vmem:[#allocation7 + $0x170] sm:$0xff]  ;;  %v123_v53 = vperm.slane %v468_v31, 1  ;;  %v240_v20 = vperm.slane %v468_v31, 4 }
  0x20   :  { %166 = vmatpush.msra.mxu2 %v158_v22  ;;  %202 = vmatpush.msra.mxu3 %v200_v40  ;;  %v198_v42 = vld [vmem:[#allocation7 + $0x168] sm:$0xff]  ;;  %v197_v43 = vld [vmem:[#allocation7 + $0x160] sm:$0xff]  ;;  %v196_v44 = vld [vmem:[#allocation7 + $0x158] sm:$0xff] }
  0x21   :  { %130 = vmatpush.msra.mxu1 %v116_v9  ;;  %v195_v45 = vld [vmem:[#allocation7 + $0x150] sm:$0xff]  ;;  %v194_v46 = vld [vmem:[#allocation7 + $0x148] sm:$0xff]  ;;  %v193_v47 = vld [vmem:[#allocation7 + $0x140] sm:$0xff]  ;;  %v162_v9 = vperm.slane %v468_v31, 2 }
  0x22   :  { %167 = vmatpush.msra.mxu2 %v157_v23  ;;  %203 = vmatpush.msra.mxu3 %v199_v41  ;;  %v192_v48 = vld [vmem:[#allocation7 + $0x138] sm:$0xff]  ;;  %v191_v49 = vld [vmem:[#allocation7 + $0x130] sm:$0xff]  ;;  %v190_v50 = vld [vmem:[#allocation7 + $0x128] sm:$0xff] }
  0x23   :  { %131 = vmatpush.msra.mxu1 %v115_v10  ;;  %v189_v51 = vld [vmem:[#allocation7 + $0x120] sm:$0xff]  ;;  %v188_v52 = vld [vmem:[#allocation7 + $0x118] sm:$0xff]  ;;  %v187_v57 = vld [vmem:[#allocation7 + $0x110] sm:$0xff] }
  0x24   :  { %168 = vmatpush.msra.mxu2 %v156_v24  ;;  %204 = vmatpush.msra.mxu3 %v198_v42  ;;  %v186_v58 = vld [vmem:[#allocation7 + $0x108] sm:$0xff]  ;;  %v185_v59 = vld [vmem:[#allocation7 + $0x100] sm:$0xff]  ;;  %v239_v60 = vld [vmem:[#allocation7 + $0x1f8] sm:$0xff]  ;;  %v262_v24 = vand.u32 127, %v261_v21 }
  0x25   :  { %132 = vmatpush.msra.mxu1 %v114_v11  ;;  %v238_v61 = vld [vmem:[#allocation7 + $0x1f0] sm:$0xff]  ;;  %241 = vmatpush.msrb.mxu0 %v239_v60  ;;  %v237_v62 = vld [vmem:[#allocation7 + $0x1e8] sm:$0xff]  ;;  %v236_v63 = vld [vmem:[#allocation7 + $0x1e0] sm:$0xff] }
  0x26   :  { %169 = vmatpush.msra.mxu2 %v155_v25  ;;  %205 = vmatpush.msra.mxu3 %v197_v43  ;;  %v235_v0 = vld [vmem:[#allocation7 + $0x1d8] sm:$0xff]  ;;  %v234_v1 = vld [vmem:[#allocation7 + $0x1d0] sm:$0xff]  ;;  %v233_v2 = vld [vmem:[#allocation7 + $0x1c8] sm:$0xff]  ;;  %vm263_vm1 = vcmp.lt.s32.totalorder %v262_v24, 4 }
  0x27   :  { %133 = vmatpush.msra.mxu1 %v113_v12  ;;  %242 = vmatpush.msrb.mxu0 %v238_v61  ;;  %v232_v3 = vld [vmem:[#allocation7 + $0x1c0] sm:$0xff]  ;;  %v231_v4 = vld [vmem:[#allocation7 + $0x1b8] sm:$0xff]  ;;  %v230_v5 = vld [vmem:[#allocation7 + $0x1b0] sm:$0xff] }
  0x28   :  { %170 = vmatpush.msra.mxu2 %v154_v26  ;;  %206 = vmatpush.msra.mxu3 %v196_v44  ;;  %v229_v6 = vld [vmem:[#allocation7 + $0x1a8] sm:$0xff]  ;;  %v228_v7 = vld [vmem:[#allocation7 + $0x1a0] sm:$0xff]  ;;  %v227_v8 = vld [vmem:[#allocation7 + $0x198] sm:$0xff] }
  0x29   :  { %134 = vmatpush.msra.mxu1 %v112_v13  ;;  %243 = vmatpush.msrb.mxu0 %v237_v62  ;;  %v226_v13 = vld [vmem:[#allocation7 + $0x190] sm:$0xff] }
  0x2a   :  { %171 = vmatpush.msra.mxu2 %v153_v27  ;;  %207 = vmatpush.msra.mxu3 %v195_v45 }
  0x2b   :  { %135 = vmatpush.msra.mxu1 %v111_v14  ;;  %244 = vmatpush.msrb.mxu0 %v236_v63  ;;  %v225_v14 = vld [vmem:[#allocation7 + $0x188] sm:$0xff] }
  0x2c   :  { %172 = vmatpush.msra.mxu2 %v152_v28  ;;  %208 = vmatpush.msra.mxu3 %v194_v46 }
  0x2d   :  { %136 = vmatpush.msra.mxu1 %v110_v15  ;;  %245 = vmatpush.msrb.mxu0 %v235_v0  ;;  %v224_v15 = vld [vmem:[#allocation7 + $0x180] sm:$0xff] }
  0x2e   :  { %173 = vmatpush.msra.mxu2 %v151_v29  ;;  %209 = vmatpush.msra.mxu3 %v193_v47 }
  0x2f   :  { %137 = vmatpush.msra.mxu1 %v109_v16  ;;  %246 = vmatpush.msrb.mxu0 %v234_v1  ;;  %v201_v16 = vperm.slane %v468_v31, 3 }
  0x30   :  { %174 = vmatpush.msra.mxu2 %v150_v30  ;;  %210 = vmatpush.msra.mxu3 %v192_v48 }
  0x31   :  { %138 = vmatpush.msra.mxu1 %v108_v17  ;;  %247 = vmatpush.msrb.mxu0 %v233_v2 }
  0x32   :  { %175 = vmatpush.msra.mxu2 %v149_v32  ;;  %211 = vmatpush.msra.mxu3 %v191_v49 }
  0x33   :  { %139 = vmatpush.msra.mxu1 %v107_v18  ;;  %248 = vmatpush.msrb.mxu0 %v232_v3 }
  0x34   :  { %176 = vmatpush.msra.mxu2 %v148_v37  ;;  %212 = vmatpush.msra.mxu3 %v190_v50 }
  0x35   :  { %249 = vmatpush.msrb.mxu0 %v231_v4 }
  0x36   :  { %177 = vmatpush.msra.mxu2 %v147_v38  ;;  %213 = vmatpush.msra.mxu3 %v189_v51 }
  0x37   :  { %250 = vmatpush.msrb.mxu0 %v230_v5 }
  0x38   :  { %178 = vmatpush.msra.mxu2 %v146_v39  ;;  %214 = vmatpush.msra.mxu3 %v188_v52 }
  0x39   :  { %251 = vmatpush.msrb.mxu0 %v229_v6 }
  0x3a   :  { %215 = vmatpush.msra.mxu3 %v187_v57 }
  0x3b   :  { %252 = vmatpush.msrb.mxu0 %v228_v7 }
  0x3c   :  { %216 = vmatpush.msra.mxu3 %v186_v58 }
  0x3d   :  { %253 = vmatpush.msrb.mxu0 %v227_v8 }
  0x3e   :  { %217 = vmatpush.msra.mxu3 %v185_v59 }
  0x3f   :  { %254 = vmatpush.msrb.mxu0 %v226_v13 }
  0x41   :  { %255 = vmatpush.msrb.mxu0 %v225_v14 }
  0x43   :  { %256 = vmatpush.msrb.mxu0 %v224_v15 }
  0x94   :  { %v103_v34 = vpop.f32.mrf.mxu0 }
  0x95   :  { %v104_v35 = vadd.f32 %v103_v34, %v81_v33 }
  0x97   :  { %v106_v36 = vmax.f32 %v104_v35, 0.0 }
  0x99   :  { %140 = vmatmul.f32.vlgmr.msra.gmra.mxu1 %v106_v36 }
 0x116   :  { %v141_v54 = vpop.f32.mrf.mxu1 }
 0x117   :  { %v142_v55 = vadd.f32 %v141_v54, %v123_v53 }
 0x119   :  { %v144_v56 = vmax.f32 %v142_v55, 0.0 }
 0x11b   :  { %179 = vmatmul.f32.vlgmr.msra.gmra.mxu2 %v144_v56 }
 0x19e   :  { %v180_v10 = vpop.f32.mrf.mxu2 }
 0x19f   :  { %v181_v11 = vadd.f32 %v180_v10, %v162_v9 }
 0x1a1   :  { %v183_v12 = vmax.f32 %v181_v11, 0.0 }
 0x1a3   :  { %218 = vmatmul.f32.vlgmr.msra.gmra.mxu3 %v183_v12 }
 0x226   :  { %v219_v17 = vpop.f32.mrf.mxu3 }
 0x227   :  { %v220_v18 = vadd.f32 %v219_v17, %v201_v16 }
 0x229   :  { %v222_v19 = vmax.f32 %v220_v18, 0.0 }
 0x22b   :  { %257 = vmatmul.f32.vlgmr.msrb.gmra.mxu0 %v222_v19 }
 0x2a8   :  { %v258_v22 = vpop.f32.mrf.mxu0 }
 0x2a9   :  { %v259_v23 = vadd.f32 %v258_v22, %v240_v20 }
 0x2ab   :  { %294 = vtanh.f32 %v259_v23 }
 0x2b1   :  { %v295_v25 = vpop.eup %294 }
 0x2b2   :  { %v265_v26 = vsel %vm263_vm1, %v295_v25, %v259_v23 }
 0x2b3   :  { %266 = vst [vmem:[#allocation10] sm:$0xff] %v265_v26 }
 0x2b4   :  { %277 = dma.vmem_to_hbm [thread:$0]  %s273_s3, 128, %s275_s11, [#allocation4]  }
 0x2b5   :  { %422 = dma.done.wait [#allocation4], 128  }
 0x2b6   :  { %423 = vsyncadd [#allocation4], 4294967168 }
 0x2b7   :  { %282 = vsyncpa [#allocation3], 1 }
 0x2b8   :  { %283 = vsyncpa [#allocation6], 1 }
 0x2b9   :  { %284 = vsyncpa [#allocation9], 1 }
 0x2ba   :  { %285 = vsyncpa [#allocation4], 1 }

</bundles_post_ra>
